<compile_context>
chip_gen: v7x
topology: tpu7x:2x2x1
jax: 0.10.0
libtpu: 0.0.40
codegen_flags: <defaults>
</compile_context>

<pallas_src>
import math

import numpy as np
import jax
import jax.numpy as jnp
from jax import lax
from jax.experimental import pallas as pl
from jax.experimental.pallas import tpu as pltpu

_BN_EPS = 1e-5
_IN_EPS = 1e-5
_LEAKY = 0.2
_CROP_W = 0.99  # abs(crop_weight=-0.99), non-trainable parameter in UNetUp


# ---------------------------------------------------------------------------
# Tiling helpers
# ---------------------------------------------------------------------------
def _round_up(x, m):
    return ((x + m - 1) // m) * m


def _pick_tile(dim, pref, mult):
    """Pick (tile, padded_dim) with padded_dim % tile == 0, tile TPU-aligned."""
    if dim >= pref:
        return pref, _round_up(dim, pref)
    t = _round_up(dim, mult)
    return t, t


def _pick_k(K, M):
    """Pick (tk, Kp).  Small K stays unpadded; small-M layers get deep K tiles."""
    if K < 128 and K % 16 == 0:
        return K, K
    Kp = _round_up(K, 128)
    cap = 2048 if M <= 128 else 640
    if Kp <= cap:
        return Kp, Kp
    for tk in range((cap // 128) * 128, 127, -128):
        if Kp % tk == 0:
            return tk, Kp
    return 128, Kp


# ---------------------------------------------------------------------------
# Kernel 1: fused (batched) matmul  C[g] = act( A[g] @ B[g] + shift )
#   A: (G, M, K) bf16 im2col patches, B: (G, K, N) bf16 weights (scale folded),
#   shift: per-output-column bias.  f32 VMEM accumulator, K = trailing
#   "arbitrary" grid axis; G / M / N axes are "parallel".
# ---------------------------------------------------------------------------
def _make_mm_kernel(act):
    def kernel(a_ref, b_ref, sh_ref, o_ref, acc_ref):
        @pl.when(pl.program_id(3) == 0)
        def _init():
            acc_ref[...] = jnp.zeros_like(acc_ref)

        acc_ref[...] += jnp.dot(a_ref[0], b_ref[0],
                                preferred_element_type=jnp.float32)

        @pl.when(pl.program_id(3) == pl.num_programs(3) - 1)
        def _finalize():
            y = acc_ref[...] + sh_ref[...]
            if act == "leaky":
                y = jnp.where(y >= 0, y, _LEAKY * y)
            elif act == "relu":
                y = jnp.maximum(y, 0.0)
            elif act == "tanh":
                y = jnp.tanh(y)
            o_ref[0] = y.astype(o_ref.dtype)

    return kernel


def fused_matmul(a, b, shift, act="none"):
    """act(A @ B + shift) per batch entry.  a:(G,M,K) b:(G,K,N) shift:(N,)."""
    G, M, K = a.shape
    _, _, N = b.shape
    tm, Mp = _pick_tile(M, 256, 16)   # bf16 sublane pack is (16, 128)
    tn, Np = _pick_tile(N, 256, 128)
    tk, Kp = _pick_k(K, M)

    a_p = jnp.pad(a.astype(jnp.bfloat16), ((0, 0), (0, Mp - M), (0, Kp - K)))
    b_p = jnp.pad(b.astype(jnp.bfloat16), ((0, 0), (0, Kp - K), (0, Np - N)))
    sh_p = jnp.pad(shift.astype(jnp.float32).reshape(1, N),
                   ((0, 0), (0, Np - N)))

    grid = (G, Mp // tm, Np // tn, Kp // tk)
    out = pl.pallas_call(
        _make_mm_kernel(act),
        out_shape=jax.ShapeDtypeStruct((G, Mp, Np), jnp.float32),
        grid_spec=pltpu.PrefetchScalarGridSpec(
            num_scalar_prefetch=0,
            grid=grid,
            in_specs=[
                pl.BlockSpec((1, tm, tk), lambda g, i, j, k: (g, i, k)),
                pl.BlockSpec((1, tk, tn), lambda g, i, j, k: (g, k, j)),
                pl.BlockSpec((1, tn), lambda g, i, j, k: (0, j)),
            ],
            out_specs=pl.BlockSpec((1, tm, tn), lambda g, i, j, k: (g, i, j)),
            scratch_shapes=[pltpu.VMEM((tm, tn), jnp.float32)],
        ),
        compiler_params=pltpu.CompilerParams(
            dimension_semantics=("parallel", "parallel", "parallel",
                                 "arbitrary")),
    )(a_p, b_p, sh_p)
    return out[:, :M, :N]


# ---------------------------------------------------------------------------
# Kernel 2: InstanceNorm2d (affine=False) + LeakyReLU(0.2), lane-dense:
#   (N, H*W, C) slab resident in VMEM, channels on the 128-lane axis.
# ---------------------------------------------------------------------------
def _in_lrelu_kernel(x_ref, o_ref):
    x = x_ref[...]
    mean = jnp.mean(x, axis=1, keepdims=True)
    xc = x - mean
    var = jnp.mean(xc * xc, axis=1, keepdims=True)
    y = xc * lax.rsqrt(var + _IN_EPS)
    o_ref[...] = jnp.where(y >= 0, y, _LEAKY * y)


def instance_norm_leaky(x):
    n, h, w, c = x.shape
    x3 = x.reshape(n, h * w, c).astype(jnp.float32)
    out = pl.pallas_call(
        _in_lrelu_kernel,
        out_shape=jax.ShapeDtypeStruct((n, h * w, c), jnp.float32),
        grid_spec=pltpu.PrefetchScalarGridSpec(
            num_scalar_prefetch=0,
            grid=(1,),
            in_specs=[pl.BlockSpec((n, h * w, c), lambda i: (0, 0, 0))],
            out_specs=pl.BlockSpec((n, h * w, c), lambda i: (0, 0, 0)),
        ),
    )(x3)
    return out.reshape(n, h, w, c)


# ---------------------------------------------------------------------------
# Conv layers (NHWC) as im2col + fused Pallas matmul
# ---------------------------------------------------------------------------
def _im2col_nhwc(x, kh, kw, stride, pad_t, pad_b, pad_l, pad_r):
    n, h, w, c = x.shape
    xp = jnp.pad(x, ((0, 0), (pad_t, pad_b), (pad_l, pad_r), (0, 0)))
    hp = h + pad_t + pad_b
    wp = w + pad_l + pad_r
    ho = (hp - kh) // stride + 1
    wo = (wp - kw) // stride + 1
    cols = []
    for di in range(kh):
        for dj in range(kw):
            cols.append(xp[:, di:di + stride * ho:stride,
                            dj:dj + stride * wo:stride, :])
    a = jnp.concatenate(cols, axis=-1)                  # (n, ho, wo, kh*kw*c)
    return a.reshape(n * ho * wo, kh * kw * c), (n, ho, wo)


def conv2d_nhwc(x, w, out_scale, shift, act, stride=2, pads=(1, 1, 1, 1),
                in_scale=None):
    """Conv2d (PyTorch OIHW weight) on an NHWC activation.

    out_scale (per cout: folded eval-BatchNorm) and in_scale (per cin: crop
    weight of a preceding skip concat) are folded into the weight matrix at
    trace time; shift (bias) + activation run inside the matmul finalize."""
    cout, cin, kh, kw = w.shape
    wf = w.astype(jnp.float32)
    if in_scale is not None:
        wf = wf * in_scale.reshape(1, cin, 1, 1)
    wf = wf * out_scale.reshape(cout, 1, 1, 1)
    bmat = wf.transpose(2, 3, 1, 0).reshape(kh * kw * cin, cout)
    a, (n, ho, wo) = _im2col_nhwc(x, kh, kw, stride, *pads)
    y = fused_matmul(a[None], bmat[None], shift, act)[0]
    return y.reshape(n, ho, wo, cout)


# ConvTranspose2d(k=4, s=2, p=1): output phase (a, b) (a = oh % 2, b = ow % 2)
# is a stride-1 2x2 conv over the input; tap (dr, dc) of phase (a, b) reads
# x[i - 1 + a + dr, j - 1 + b + dc] and uses W[:, :, _KMAP[a][dr], _KMAP[b][dc]].
_KMAP = ((3, 1), (2, 0))


def conv_transpose2d_nhwc(x, wt, out_scale, shift, act, in_scale=None):
    """ConvTranspose2d(k=4, s=2, p=1, bias=False) via 4-phase decomposition,
    all phases run as one batched Pallas matmul (phase = leading grid axis)."""
    n, h, w, cin = x.shape
    cout = wt.shape[1]
    wf = wt.astype(jnp.float32)
    if in_scale is not None:
        wf = wf * in_scale.reshape(cin, 1, 1, 1)
    wf = wf * out_scale.reshape(1, cout, 1, 1)

    xp = jnp.pad(x, ((0, 0), (1, 1), (1, 1), (0, 0)))
    a_phases, b_phases = [], []
    for a in range(2):
        for b in range(2):
            cols, rows = [], []
            for dr in range(2):
                for dc in range(2):
                    cols.append(xp[:, a + dr:a + dr + h,
                                     b + dc:b + dc + w, :])
                    rows.append(wf[:, :, _KMAP[a][dr], _KMAP[b][dc]])
            a_phases.append(
                jnp.concatenate(cols, axis=-1).reshape(n * h * w, 4 * cin))
            b_phases.append(jnp.concatenate(rows, axis=0))
    A = jnp.stack(a_phases)                              # (4, n*h*w, 4*cin)
    B = jnp.stack(b_phases)                              # (4, 4*cin, cout)
    y = fused_matmul(A, B, shift, act)                   # (4, n*h*w, cout)
    y = y.reshape(2, 2, n, h, w, cout).transpose(2, 3, 0, 4, 1, 5)
    return y.reshape(n, 2 * h, 2 * w, cout)


# Upsample(2x, nearest) -> ZeroPad2d((1,0,1,0)) -> Conv2d(k=4, padding=1):
# each output phase (a, b) is a 3x3 conv over x with per-phase summed taps.
# _FINAL_T[di, dj, a, b, r, s] = 1 iff original tap (di, dj) of phase (a, b)
# lands on 3x3 window position (r, s).
def _build_final_t():
    t = np.zeros((4, 4, 2, 2, 3, 3), np.float32)
    for a in range(2):
        rmap = [1 + ((a + di - 2) // 2) for di in range(4)]
        for b in range(2):
            smap = [1 + ((b + dj - 2) // 2) for dj in range(4)]
            for di in range(4):
                for dj in range(4):
                    t[di, dj, a, b, rmap[di], smap[dj]] = 1.0
    return t


_FINAL_T = _build_final_t()


def final_upsample_conv(x, w, bias, in_scale=None):
    """Upsample(2x nearest) + ZeroPad2d((1,0,1,0)) + Conv2d(k=4,p=1) + Tanh
    without materializing the upsampled tensor (single matmul, K = 9*cin)."""
    n, h, wd, cin = x.shape
    cout = w.shape[0]
    wf = w.astype(jnp.float32)
    if in_scale is not None:
        wf = wf * in_scale.reshape(1, cin, 1, 1)
    bmat = jnp.einsum("oicd,cdabrs->rsiabo", wf, _FINAL_T)
    bmat = bmat.reshape(9 * cin, 4 * cout)
    a, _ = _im2col_nhwc(x, 3, 3, 1, 1, 1, 1, 1)          # (n*h*wd, 9*cin)
    shift = jnp.tile(bias.astype(jnp.float32), 4)
    y = fused_matmul(a[None], bmat[None], shift, act="tanh")[0]
    y = y.reshape(n, h, wd, 2, 2, cout).transpose(0, 1, 3, 2, 4, 5)
    return y.reshape(n, 2 * h, 2 * wd, cout)


# ---------------------------------------------------------------------------
# Parameter init (PyTorch-default-like uniform init; deterministic)
# ---------------------------------------------------------------------------
def _conv_w(key, cout, cin, k=4):
    bound = 1.0 / math.sqrt(cin * k * k)
    return jax.random.uniform(key, (cout, cin, k, k), jnp.float32, -bound, bound)


def _convt_w(key, cin, cout, k=4):
    bound = 1.0 / math.sqrt(cout * k * k)
    return jax.random.uniform(key, (cin, cout, k, k), jnp.float32, -bound, bound)


def _bias(key, c, fan_in):
    bound = 1.0 / math.sqrt(fan_in)
    return jax.random.uniform(key, (c,), jnp.float32, -bound, bound)


def init_params(key):
    ks = iter(jax.random.split(key, 32))
    g = {
        "d1_w": _conv_w(next(ks), 64, 3),
        "d2_w": _conv_w(next(ks), 128, 64),
        "d3_w": _conv_w(next(ks), 256, 128),
        "d4_w": _conv_w(next(ks), 512, 256),
        "d5_w": _conv_w(next(ks), 512, 512),
        "d6_w": _conv_w(next(ks), 512, 512),
        "u1_w": _convt_w(next(ks), 512, 512),
        "u2_w": _convt_w(next(ks), 1024, 512),
        "u3_w": _convt_w(next(ks), 1024, 256),
        "u4_w": _convt_w(next(ks), 512, 128),
        "u5_w": _convt_w(next(ks), 256, 64),
        "fin_w": _conv_w(next(ks), 3, 128),
        "fin_b": _bias(next(ks), 3, 128 * 16),
    }
    d = {
        "c1_w": _conv_w(next(ks), 64, 6), "c1_b": _bias(next(ks), 64, 6 * 16),
        "c2_w": _conv_w(next(ks), 128, 64), "c2_b": _bias(next(ks), 128, 64 * 16),
        "c3_w": _conv_w(next(ks), 256, 128), "c3_b": _bias(next(ks), 256, 128 * 16),
        "c4_w": _conv_w(next(ks), 512, 256), "c4_b": _bias(next(ks), 512, 256 * 16),
        "c5_w": _conv_w(next(ks), 1, 512),
    }
    return {"G": g, "D": d}


# ---------------------------------------------------------------------------
# GeneratorUNet / PixelDiscriminator / GAN forward  (NHWC internally)
# (ad_res=[0]*5 -> no ResnetBlocks; Dropout = identity in eval mode)
# ---------------------------------------------------------------------------
def _bn_scale(c):
    # Eval-mode BatchNorm2d with fresh stats (gamma=1, beta=0, mean=0, var=1).
    return jnp.full((c,), 1.0 / math.sqrt(1.0 + _BN_EPS), jnp.float32)


def _ones(c):
    return jnp.ones((c,), jnp.float32)


def _zeros(c):
    return jnp.zeros((c,), jnp.float32)


def _crop_scale(half):
    # Input channels of the next layer are [x + skip | skip]; the skip half
    # carries the (non-trainable) crop weight 0.99 folded into the weights.
    return jnp.concatenate([jnp.ones((half,), jnp.float32),
                            jnp.full((half,), _CROP_W, jnp.float32)])


def generator_forward(p, x):
    # TODO(synk): Dropout (p=0.5) and BatchNorm run with eval-mode semantics
    # (deterministic forward; BN uses fresh running stats).
    d1 = conv2d_nhwc(x,  p["d1_w"], _ones(64),     _zeros(64),  "leaky")
    d2 = conv2d_nhwc(d1, p["d2_w"], _bn_scale(128), _zeros(128), "leaky")
    d3 = conv2d_nhwc(d2, p["d3_w"], _bn_scale(256), _zeros(256), "leaky")
    d4 = conv2d_nhwc(d3, p["d4_w"], _bn_scale(512), _zeros(512), "leaky")
    d5 = conv2d_nhwc(d4, p["d5_w"], _bn_scale(512), _zeros(512), "leaky")
    d6 = conv2d_nhwc(d5, p["d6_w"], _ones(512),    _zeros(512), "leaky")

    u1x = conv_transpose2d_nhwc(d6, p["u1_w"], _bn_scale(512), _zeros(512), "relu")
    u1 = jnp.concatenate([u1x + d5, d5], axis=-1)   # crop_w folded into u2 weights
    u2x = conv_transpose2d_nhwc(u1, p["u2_w"], _bn_scale(512), _zeros(512), "relu",
                                in_scale=_crop_scale(512))
    u2 = jnp.concatenate([u2x + d4, d4], axis=-1)
    u3x = conv_transpose2d_nhwc(u2, p["u3_w"], _bn_scale(256), _zeros(256), "relu",
                                in_scale=_crop_scale(512))
    u3 = jnp.concatenate([u3x + d3, d3], axis=-1)
    u4x = conv_transpose2d_nhwc(u3, p["u4_w"], _bn_scale(128), _zeros(128), "relu",
                                in_scale=_crop_scale(256))
    u4 = jnp.concatenate([u4x + d2, d2], axis=-1)
    u5x = conv_transpose2d_nhwc(u4, p["u5_w"], _bn_scale(64), _zeros(64), "relu",
                                in_scale=_crop_scale(128))
    u5 = jnp.concatenate([u5x + d1, d1], axis=-1)

    # Upsample(2x) -> ZeroPad2d((1,0,1,0)) -> Conv2d(128,3,4,p=1) -> Tanh, folded.
    return final_upsample_conv(u5, p["fin_w"], p["fin_b"],
                               in_scale=_crop_scale(64))


def discriminator_forward(p, img_a, img_b):
    x = jnp.concatenate([img_b - img_a, img_b], axis=-1)
    x = conv2d_nhwc(x, p["c1_w"], _ones(64), p["c1_b"], "leaky")
    x = conv2d_nhwc(x, p["c2_w"], _ones(128), p["c2_b"], "none")
    x = instance_norm_leaky(x)
    x = conv2d_nhwc(x, p["c3_w"], _ones(256), p["c3_b"], "none")
    x = instance_norm_leaky(x)
    x = conv2d_nhwc(x, p["c4_w"], _ones(512), p["c4_b"], "none")
    x = instance_norm_leaky(x)
    # ZeroPad2d((1,0,1,0)) + Conv2d(512, 1, 4, padding=1, bias=False)
    x = conv2d_nhwc(x, p["c5_w"], _ones(1), _zeros(1), "none",
                    stride=1, pads=(2, 1, 2, 1))
    return x


def gan_forward(params, source, target):
    src = source.transpose(0, 2, 3, 1)        # NCHW -> NHWC once
    tgt = target.transpose(0, 2, 3, 1)
    n = src.shape[0]

    generate = generator_forward(params["G"], src)

    # Batch the two discriminator passes (identical weights, shared `source`).
    img_a = jnp.concatenate([generate, tgt], axis=0)
    img_b = jnp.concatenate([src, src], axis=0)
    d_out = discriminator_forward(params["D"], img_a, img_b)
    source_generate = d_out[:n]
    source_target = d_out[n:]
    # .detach() only affects autograd; forward values are identical.
    source_generate2 = source_generate

    to_nchw = lambda t: t.transpose(0, 3, 1, 2)
    return (to_nchw(generate), to_nchw(source_generate),
            to_nchw(source_target), to_nchw(source_generate2))


# ---------------------------------------------------------------------------
if __name__ == "__main__":
    key = jax.random.PRNGKey(0)
    k_src, k_tgt, k_par, k_t1, k_t2, k_t3, k_t4, k_t5 = jax.random.split(key, 8)
    hi = lax.Precision.HIGHEST

    def _q(a, scale=8.0):
        # Quantize so values are exactly bf16-representable -> tight tolerances.
        return jnp.round(a * scale) / scale

    # --- unit test 1: Conv2d(s=2,p=1) + bias + LeakyReLU vs XLA conv ---------
    xs = _q(jax.random.normal(k_t1, (2, 16, 16, 3), jnp.float32))
    ws = _q(jax.random.normal(k_t2, (64, 3, 4, 4), jnp.float32)) * 0.0625
    bs = jax.random.normal(k_t3, (64,), jnp.float32) * 0.1
    ref = lax.conv_general_dilated(
        xs.transpose(0, 3, 1, 2), ws, (2, 2), ((1, 1), (1, 1)),
        dimension_numbers=("NCHW", "OIHW", "NCHW"), precision=hi)
    ref = ref + bs.reshape(1, -1, 1, 1)
    ref = jnp.where(ref >= 0, ref, _LEAKY * ref)
    got = conv2d_nhwc(xs, ws, _ones(64), bs, "leaky").transpose(0, 3, 1, 2)
    assert bool(jnp.allclose(got, ref, atol=2e-4, rtol=2e-4)), "conv2d mismatch"

    # --- unit test 2: ConvTranspose2d(k=4,s=2,p=1) + ReLU vs XLA dilated conv
    xt = _q(jax.random.normal(k_t2, (2, 5, 5, 16), jnp.float32))
    wt = _q(jax.random.normal(k_t3, (16, 32, 4, 4), jnp.float32)) * 0.0625
    wconv = jnp.flip(wt, axis=(2, 3)).transpose(1, 0, 2, 3)        # OIHW
    ref = lax.conv_general_dilated(
        xt.transpose(0, 3, 1, 2), wconv, (1, 1), ((2, 2), (2, 2)),
        lhs_dilation=(2, 2), dimension_numbers=("NCHW", "OIHW", "NCHW"),
        precision=hi)
    ref = jnp.maximum(ref, 0.0)
    got = conv_transpose2d_nhwc(xt, wt, _ones(32), _zeros(32),
                                "relu").transpose(0, 3, 1, 2)
    assert got.shape == ref.shape
    assert bool(jnp.allclose(got, ref, atol=2e-4, rtol=2e-4)), "convT mismatch"

    # --- unit test 3: Upsample(2x)+ZeroPad2d((1,0,1,0))+Conv+Tanh folding ----
    xf = _q(jax.random.normal(k_t4, (2, 6, 6, 16), jnp.float32))
    wfin = _q(jax.random.normal(k_t5, (3, 16, 4, 4), jnp.float32)) * 0.0625
    bfin = jax.random.normal(k_t1, (3,), jnp.float32) * 0.1
    up = jnp.repeat(jnp.repeat(xf, 2, axis=1), 2, axis=2)
    ref = lax.conv_general_dilated(
        up.transpose(0, 3, 1, 2), wfin, (1, 1), ((2, 1), (2, 1)),
        dimension_numbers=("NCHW", "OIHW", "NCHW"), precision=hi)
    ref = jnp.tanh(ref + bfin.reshape(1, -1, 1, 1))
    got = final_upsample_conv(xf, wfin, bfin).transpose(0, 3, 1, 2)
    assert got.shape == ref.shape
    assert bool(jnp.allclose(got, ref, atol=5e-4, rtol=5e-4)), "final conv mismatch"

    # --- unit test 4: InstanceNorm2d + LeakyReLU ------------------------------
    xn = jax.random.normal(k_t5, (2, 8, 8, 128), jnp.float32)
    m = xn.mean(axis=(1, 2), keepdims=True)
    v = ((xn - m) ** 2).mean(axis=(1, 2), keepdims=True)
    refn = (xn - m) / jnp.sqrt(v + _IN_EPS)
    refn = jnp.where(refn >= 0, refn, _LEAKY * refn)
    assert bool(jnp.allclose(instance_norm_leaky(xn), refn,
                             atol=1e-4, rtol=1e-4)), "instance norm mismatch"

    # --- full GAN forward ------------------------------------------------------
    # 64x64 is the smallest spatial size that survives the 6 stride-2 downsamplings.
    N, C, H, W = 2, 3, 64, 64
    source = jax.random.uniform(k_src, (N, C, H, W), jnp.float32)
    target = jax.random.uniform(k_tgt, (N, C, H, W), jnp.float32)
    params = init_params(k_par)

    fwd = jax.jit(gan_forward)
    generate, sg, st, sg2 = jax.block_until_ready(fwd(params, source, target))

    assert generate.shape == (N, 3, 64, 64)
    assert sg.shape == (N, 1, 4, 4) and st.shape == (N, 1, 4, 4) and sg2.shape == (N, 1, 4, 4)
    assert bool(jnp.all(jnp.abs(generate) <= 1.0 + 1e-5))          # tanh range
    assert bool(jnp.all(jnp.isfinite(generate)))
    assert bool(jnp.all(jnp.isfinite(sg))) and bool(jnp.all(jnp.isfinite(st)))

    print("KERNEL_OK")
</pallas_src>

<mosaic_0001>
module attributes {stable_mosaic.version = 11 : i64} {
  func.func @kernel(%arg0: i32, %arg1: i32, %arg2: i32, %arg3: i32, %arg4: memref<1x128x48xbf16, #tpu.memory_space<vmem>>, %arg5: memref<1x48x128xbf16, #tpu.memory_space<vmem>>, %arg6: memref<1x128xf32, #tpu.memory_space<vmem>>, %arg7: memref<1x128x128xf32, #tpu.memory_space<vmem>>, %arg8: memref<128x128xf32, #tpu.memory_space<vmem>>) attributes {dimension_semantics = [#tpu.dimension_semantics<parallel>, #tpu.dimension_semantics<parallel>, #tpu.dimension_semantics<parallel>, #tpu.dimension_semantics<arbitrary>], iteration_bounds = array<i64: 1, 1, 1, 1>, scalar_prefetch = 0 : i64, scratch_operands = 1 : i64, tpu.core_type = #tpu.core_type<tc>, window_params = [{transform_indices = @transform_0, window_bounds = array<i64: 1, 128, 48>}, {transform_indices = @transform_1, window_bounds = array<i64: 1, 48, 128>}, {transform_indices = @transform_2, window_bounds = array<i64: 1, 128>}, {transform_indices = @transform_3, window_bounds = array<i64: 1, 128, 128>}]} {
    %c0_i32 = arith.constant 0 : i32
    %0 = arith.cmpi eq, %arg3, %c0_i32 : i32
    %1 = arith.extui %0 : i1 to i32
    %c0_i32_0 = arith.constant 0 : i32
    %2 = arith.cmpi ne, %1, %c0_i32_0 : i32
    scf.if %2 {
      %cst_12 = arith.constant 0.000000e+00 : f32
      %14 = vector.broadcast %cst_12 : f32 to vector<128x128xf32>
      %c0_13 = arith.constant 0 : index
      %c0_14 = arith.constant 0 : index
      %15 = vector.load %arg8[%c0_13, %c0_14] : memref<128x128xf32, #tpu.memory_space<vmem>>, vector<128x128xf32>
      tpu.vector_store %arg8[%c0_13, %c0_14], %14 {strides = array<i32>} : memref<128x128xf32, #tpu.memory_space<vmem>>, vector<128x128xf32>,
    } else {
    }
    %c0 = arith.constant 0 : index
    %c0_1 = arith.constant 0 : index
    %3 = vector.load %arg8[%c0, %c0_1] : memref<128x128xf32, #tpu.memory_space<vmem>>, vector<128x128xf32>
    %c0_2 = arith.constant 0 : index
    %c0_3 = arith.constant 0 : index
    %c0_4 = arith.constant 0 : index
    %4 = vector.load %arg4[%c0_2, %c0_3, %c0_4] : memref<1x128x48xbf16, #tpu.memory_space<vmem>>, vector<1x128x48xbf16>
    %5 = vector.shape_cast %4 : vector<1x128x48xbf16> to vector<128x48xbf16>
    %c0_5 = arith.constant 0 : index
    %c0_6 = arith.constant 0 : index
    %c0_7 = arith.constant 0 : index
    %6 = vector.load %arg5[%c0_5, %c0_6, %c0_7] : memref<1x48x128xbf16, #tpu.memory_space<vmem>>, vector<1x48x128xbf16>
    %7 = vector.shape_cast %6 : vector<1x48x128xbf16> to vector<48x128xbf16>
    %cst = arith.constant dense<0.000000e+00> : vector<128x128xf32>
    %8 = tpu.matmul %5, %7, %cst {dimension_numbers = #tpu.dot_dimension_numbers<[1], [0], [0], [1], [0, 0, 1, 1], [], []>} : vector<128x48xbf16>, vector<48x128xbf16>, vector<128x128xf32> -> vector<128x128xf32>
    %9 = arith.addf %3, %8 : vector<128x128xf32>
    %c0_8 = arith.constant 0 : index
    %c0_9 = arith.constant 0 : index
    %10 = vector.load %arg8[%c0_8, %c0_9] : memref<128x128xf32, #tpu.memory_space<vmem>>, vector<128x128xf32>
    tpu.vector_store %arg8[%c0_8, %c0_9], %9 {strides = array<i32>} : memref<128x128xf32, #tpu.memory_space<vmem>>, vector<128x128xf32>,
    %c0_i32_10 = arith.constant 0 : i32
    %11 = arith.cmpi eq, %arg3, %c0_i32_10 : i32
    %12 = arith.extui %11 : i1 to i32
    %c0_i32_11 = arith.constant 0 : i32
    %13 = arith.cmpi ne, %12, %c0_i32_11 : i32
    scf.if %13 {
      %c0_12 = arith.constant 0 : index
      %c0_13 = arith.constant 0 : index
      %14 = vector.load %arg8[%c0_12, %c0_13] : memref<128x128xf32, #tpu.memory_space<vmem>>, vector<128x128xf32>
      %c0_14 = arith.constant 0 : index
      %c0_15 = arith.constant 0 : index
      %15 = vector.load %arg6[%c0_14, %c0_15] : memref<1x128xf32, #tpu.memory_space<vmem>>, vector<1x128xf32>
      %16 = vector.broadcast %15 : vector<1x128xf32> to vector<128x128xf32>
      %17 = arith.addf %14, %16 : vector<128x128xf32>
      %cst_16 = arith.constant 0.000000e+00 : f32
      %18 = vector.broadcast %cst_16 : f32 to vector<128x128xf32>
      %19 = arith.cmpf oge, %17, %18 : vector<128x128xf32>
      %cst_17 = arith.constant 2.000000e-01 : f32
      %20 = vector.broadcast %cst_17 : f32 to vector<128x128xf32>
      %21 = arith.mulf %20, %17 : vector<128x128xf32>
      %22 = arith.select %19, %17, %21 : vector<128x128xi1>, vector<128x128xf32>
      %c0_18 = arith.constant 0 : index
      %c0_19 = arith.constant 0 : index
      %c0_20 = arith.constant 0 : index
      %23 = vector.load %arg7[%c0_18, %c0_19, %c0_20] : memref<1x128x128xf32, #tpu.memory_space<vmem>>, vector<1x128x128xf32>
      %24 = vector.shape_cast %23 : vector<1x128x128xf32> to vector<128x128xf32>
      %25 = vector.shape_cast %22 : vector<128x128xf32> to vector<1x128x128xf32>
      tpu.vector_store %arg7[%c0_18, %c0_19, %c0_20], %25 {strides = array<i32>} : memref<1x128x128xf32, #tpu.memory_space<vmem>>, vector<1x128x128xf32>,
    } else {
    }
    return
  }
  func.func @transform_0(%arg0: i32, %arg1: i32, %arg2: i32, %arg3: i32) -> (i32, i32, i32) {
    %c0_i32 = arith.constant 0 : i32
    return %arg0, %arg1, %arg3 : i32, i32, i32
  }
  func.func @transform_1(%arg0: i32, %arg1: i32, %arg2: i32, %arg3: i32) -> (i32, i32, i32) {
    %c0_i32 = arith.constant 0 : i32
    return %arg0, %arg3, %arg2 : i32, i32, i32
  }
  func.func @transform_2(%arg0: i32, %arg1: i32, %arg2: i32, %arg3: i32) -> (i32, i32) {
    %c0_i32 = arith.constant 0 : i32
    %c0_i32_0 = arith.constant 0 : i32
    return %c0_i32, %arg2 : i32, i32
  }
  func.func @transform_3(%arg0: i32, %arg1: i32, %arg2: i32, %arg3: i32) -> (i32, i32, i32) {
    %c0_i32 = arith.constant 0 : i32
    return %arg0, %arg1, %arg2 : i32, i32, i32
  }
}

</mosaic_0001>

<bundles_post_ra>
// kernel: tpu_custom_call.1
= control target key start
LH: loop header
LB: loop body
LE: loop exit
PB: predicated region body
PF: predicated region fallthrough
CT: control target
= control target key end

     0   :  { %vm132_vm0 = vcmask 392192   ;;  %s602_s0 = inlined_call_operand.vmem [shape: bf16[1,128,48], index: 0, kind: input, shape index: {}]   ;;  %s603_s1 = inlined_call_operand.vmem [shape: bf16[1,48,128], index: 1, kind: input, shape index: {}]   ;;  %s604_s2 = inlined_call_operand.vmem [shape: f32[1,128], index: 2, kind: input, shape index: {}]   ;;  %s605_s3 = inlined_call_operand.hbm [shape: f32[1,128,128], index: 3, kind: output, shape index: {}]  }
   0x1   :  { %v470_v0 = vld [vmem:[%s603_s1] sm:$0xff]   ;;  %v471_v1 = vld [vmem:[%s603_s1 + $0x8] sm:$0xff]   ;;  %v472_v2 = vld [vmem:[%s603_s1 + $0x10] sm:$0xff]  }
   0x2   :  { %439 = vmatprep.subr.bf16.mxu0 %v470_v0  ;;  %461 = vmatprep.subr.bf16.mxu1 %v470_v0  ;;  %v473_v3 = vld [vmem:[%s602_s0] sm:$0xff]   ;;  %v475_v5 = vld [vmem:[%s602_s0 + $0x8] sm:$0xff]   ;;  %v477_v7 = vld [vmem:[%s602_s0 + $0x10] sm:$0xff]  }
   0x3   :  { %440 = vmatpush3.bf16.msra.mxu0 %v470_v0  ;;  %464 = vmatpush3.bf16.msra.mxu1 %v470_v0  ;;  %v474_v4 = vld [vmem:[%s602_s0 + $0x20] sm:$0xff]   ;;  %v476_v6 = vld [vmem:[%s602_s0 + $0x28] sm:$0xff]   ;;  %v478_v8 = vld [vmem:[%s602_s0 + $0x30] sm:$0xff]  }
   0x4   :  { %441 = vmatprep.subr.bf16.mxu0 %v471_v1  ;;  %462 = vmatprep.subr.bf16.mxu1 %v471_v1 }
   0x5   :  { %445 = vmatprep.mubr.msk.bf16.mxu0 %vm132_vm0, %v473_v3  ;;  %453 = vmatprep.mubr.msk.bf16.mxu1 %vm132_vm0, %v474_v4 }
   0x7   :  { %442 = vmatpush3.bf16.msra.mxu0 %v471_v1  ;;  %465 = vmatpush3.bf16.msra.mxu1 %v471_v1 }
   0x8   :  { %443 = vmatprep.subr.bf16.mxu0 %v472_v2  ;;  %463 = vmatprep.subr.bf16.mxu1 %v472_v2 }
   0xb   :  { %444 = vmatpush3.bf16.msra.mxu0 %v472_v2  ;;  %466 = vmatpush3.bf16.msra.mxu1 %v472_v2 }
   0xc   :  { %8 = vsyncpa [#allocation4], 0  ;;  %v479_v9 = vld [vmem:[%s602_s0 + $0x18] sm:$0xff]   ;;  %v572_v11 = vld [vmem:[%s604_s2] ss:$0 sm:$0xff] }
   0xd   :  { %v480_v10 = vld [vmem:[%s602_s0 + $0x38] sm:$0xff]   ;;  %s505_s0 = smov [#allocation3]  }
   0xe   :  { %446 = vmatmul.mubr.msk.bf16.vlgmr.msra.gmra.mrb[0].mxu0 %vm132_vm0, %v475_v5  ;;  %454 = vmatmul.mubr.msk.bf16.vlgmr.msra.gmra.mrb[0].mxu1 %vm132_vm0, %v476_v6  ;;  %s397_s2 = sshll.u32 %s505_s0, 4  ;;  %s398_s2 = int_to_ptr.vmem [resolvable:$true] %s397_s2 }
   0xf   :  { %449 = vmatprep.mubr.msk.bf16.mxu0 %vm132_vm0, %v477_v7  ;;  %457 = vmatprep.mubr.msk.bf16.mxu1 %vm132_vm0, %v478_v8  ;;  %s481_s8 = scalar_lea.vmem %s398_s2, 2048  ;;  %p486_p1 = scmp.lt.s32.totalorder %s398_s2, %s398_s2 }
  0x10   :  { %p482_p0 = scmp.ne.s32.totalorder %s398_s2, %s481_s8  ;;  %p487_p2 = scmp.lt.s32.totalorder %s481_s8, %s481_s8 }
  0x12   :  { %p488_p3 = por %p487_p2, %p486_p1 }
  0x14   :  { %p489_p4 = pnand %p488_p3, %p482_p0 }
  0x16   :  { %450 = vmatmul.mubr.msk.bf16.gmra.mrb[4].mxu0 %vm132_vm0, %v479_v9  ;;  %458 = vmatmul.mubr.msk.bf16.gmra.mrb[4].mxu1 %vm132_vm0, %v480_v10 }
  0xe1   :  { %v447_v12 = vpop.f32.mrb[0].mxu0  ;;  %v455_v13 = vpop.f32.mrb[0].mxu1 }
  0xe2   :  { %v314_v14 = vadd.f32 %v447_v12, %v572_v11  ;;  %v322_v15 = vadd.f32 %v455_v13, %v572_v11  ;;  %v191_v16 = vpop.f32.mrb[1].mxu0  ;;  %v223_v17 = vpop.f32.mrb[1].mxu1 }
  0xe3   :  { %v312_v18 = vadd.f32 %v572_v11, %v191_v16  ;;  %v320_v19 = vadd.f32 %v572_v11, %v223_v17  ;;  %v448_v20 = vpop.f32.mrb[2].mxu0  ;;  %v456_v21 = vpop.f32.mrb[2].mxu1 }
  0xe4   :  { %vm330_vm1 = vcmp.ge.f32.partialorder %v314_v14, 0.0  ;;  %v346_v22 = vmul.f32 0.2, %v314_v14  ;;  %vm338_vm2 = vcmp.ge.f32.partialorder %v322_v15, 0.0  ;;  %v354_v23 = vmul.f32 0.2, %v322_v15 }
  0xe5   :  { %vm328_vm3 = vcmp.ge.f32.partialorder %v312_v18, 0.0  ;;  %v344_v24 = vmul.f32 0.2, %v312_v18  ;;  %vm336_vm4 = vcmp.ge.f32.partialorder %v320_v19, 0.0  ;;  %v352_v25 = vmul.f32 0.2, %v320_v19 }
  0xe6   :  { %v362_v26 = vsel %vm330_vm1, %v314_v14, %v346_v22  ;;  %v370_v27 = vsel %vm338_vm2, %v322_v15, %v354_v23  ;;  %v315_v28 = vadd.f32 %v448_v20, %v572_v11  ;;  %v323_v29 = vadd.f32 %v456_v21, %v572_v11  ;;  %v194_v30 = vpop.f32.mrb[3].mxu0  ;;  %v226_v31 = vpop.f32.mrb[3].mxu1 }
  0xe7   :  { %378 = vst [vmem:[#allocation3 + $0x10] sm:$0xff] %v362_v26  ;;  %386 = vst [vmem:[#allocation3 + $0x50] sm:$0xff] %v370_v27  ;;  %v360_v32 = vsel %vm328_vm3, %v312_v18, %v344_v24  ;;  %v368_v33 = vsel %vm336_vm4, %v320_v19, %v352_v25  ;;  %v313_v34 = vadd.f32 %v572_v11, %v194_v30 }
  0xe8   :  { %v321_v35 = vadd.f32 %v572_v11, %v226_v31  ;;  %376 = vst [vmem:[#allocation3] sm:$0xff] %v360_v32  ;;  %384 = vst [vmem:[#allocation3 + $0x40] sm:$0xff] %v368_v33  ;;  %vm331_vm5 = vcmp.ge.f32.partialorder %v315_v28, 0.0  ;;  %v347_v36 = vmul.f32 0.2, %v315_v28  ;;  %vm339_vm6 = vcmp.ge.f32.partialorder %v323_v29, 0.0 }
  0xe9   :  { %v355_v37 = vmul.f32 0.2, %v323_v29  ;;  %vm329_vm7 = vcmp.ge.f32.partialorder %v313_v34, 0.0  ;;  %v345_v38 = vmul.f32 0.2, %v313_v34  ;;  %v451_v42 = vpop.f32.mrb[4].mxu0 }
  0xea   :  { %vm337_vm8 = vcmp.ge.f32.partialorder %v321_v35, 0.0  ;;  %v353_v39 = vmul.f32 0.2, %v321_v35  ;;  %v363_v40 = vsel %vm331_vm5, %v315_v28, %v347_v36  ;;  %v459_v43 = vpop.f32.mrb[4].mxu1  ;;  %v318_v46 = vadd.f32 %v451_v42, %v572_v11  ;;  %v207_v48 = vpop.f32.mrb[5].mxu0 }
  0xeb   :  { %v371_v41 = vsel %vm339_vm6, %v323_v29, %v355_v37  ;;  %379 = vst [vmem:[#allocation3 + $0x18] sm:$0xff] %v363_v40  ;;  %v361_v44 = vsel %vm329_vm7, %v313_v34, %v345_v38  ;;  %v326_v47 = vadd.f32 %v459_v43, %v572_v11  ;;  %v239_v49 = vpop.f32.mrb[5].mxu1  ;;  %v316_v50 = vadd.f32 %v572_v11, %v207_v48  ;;  %v452_v52 = vpop.f32.mrb[6].mxu0 }
  0xec   :  { %387 = vst [vmem:[#allocation3 + $0x58] sm:$0xff] %v371_v41  ;;  %v369_v45 = vsel %vm337_vm8, %v321_v35, %v353_v39  ;;  %377 = vst [vmem:[#allocation3 + $0x8] sm:$0xff] %v361_v44  ;;  %v324_v51 = vadd.f32 %v572_v11, %v239_v49  ;;  %v460_v53 = vpop.f32.mrb[6].mxu1  ;;  %vm334_vm9 = vcmp.ge.f32.partialorder %v318_v46, 0.0  ;;  %v350_v54 = vmul.f32 0.2, %v318_v46 }
  0xed   :  { %385 = vst [vmem:[#allocation3 + $0x48] sm:$0xff] %v369_v45  ;;  %vm342_vm10 = vcmp.ge.f32.partialorder %v326_v47, 0.0  ;;  %v358_v55 = vmul.f32 0.2, %v326_v47  ;;  %vm332_vm11 = vcmp.ge.f32.partialorder %v316_v50, 0.0  ;;  %v319_v60 = vadd.f32 %v452_v52, %v572_v11  ;;  %v210_v62 = vpop.f32.mrb[7].mxu0 }
  0xee   :  { %v348_v56 = vmul.f32 0.2, %v316_v50  ;;  %vm340_vm12 = vcmp.ge.f32.partialorder %v324_v51, 0.0  ;;  %v356_v57 = vmul.f32 0.2, %v324_v51  ;;  %v366_v58 = vsel %vm334_vm9, %v318_v46, %v350_v54  ;;  %v242_v63 = vpop.f32.mrb[7].mxu1 }
  0xef   :  { %v374_v59 = vsel %vm342_vm10, %v326_v47, %v358_v55  ;;  %v327_v61 = vadd.f32 %v460_v53, %v572_v11  ;;  %382 = vst [vmem:[#allocation3 + $0x30] sm:$0xff] %v366_v58  ;;  %v317_v2 = vadd.f32 %v572_v11, %v210_v62  ;;  %v325_v3 = vadd.f32 %v572_v11, %v242_v63 }
  0xf0   :  { %390 = vst [vmem:[#allocation3 + $0x70] sm:$0xff] %v374_v59  ;;  %v364_v0 = vsel %vm332_vm11, %v316_v50, %v348_v56  ;;  %v372_v1 = vsel %vm340_vm12, %v324_v51, %v356_v57  ;;  %vm335_vm13 = vcmp.ge.f32.partialorder %v319_v60, 0.0  ;;  %v351_v4 = vmul.f32 0.2, %v319_v60 }
  0xf1   :  { %380 = vst [vmem:[#allocation3 + $0x20] sm:$0xff] %v364_v0  ;;  %388 = vst [vmem:[#allocation3 + $0x60] sm:$0xff] %v372_v1  ;;  %vm343_vm14 = vcmp.ge.f32.partialorder %v327_v61, 0.0  ;;  %v359_v5 = vmul.f32 0.2, %v327_v61  ;;  %vm333_vm15 = vcmp.ge.f32.partialorder %v317_v2, 0.0 }
  0xf2   :  { %v349_v6 = vmul.f32 0.2, %v317_v2  ;;  %vm341_vm0 = vcmp.ge.f32.partialorder %v325_v3, 0.0  ;;  %v357_v7 = vmul.f32 0.2, %v325_v3  ;;  %v367_v8 = vsel %vm335_vm13, %v319_v60, %v351_v4 }
  0xf3   :  { %v375_v9 = vsel %vm343_vm14, %v327_v61, %v359_v5  ;;  %383 = vst [vmem:[#allocation3 + $0x38] sm:$0xff] %v367_v8 }
  0xf4   :  { %391 = vst [vmem:[#allocation3 + $0x78] sm:$0xff] %v375_v9  ;;  %v365_v10 = vsel %vm333_vm15, %v317_v2, %v349_v6  ;;  %v373_v12 = vsel %vm341_vm0, %v325_v3, %v357_v7 }
  0xf5   :  { %381 = vst [vmem:[#allocation3 + $0x28] sm:$0xff] %v365_v10  ;;  %389 = vst [vmem:[#allocation3 + $0x68] sm:$0xff] %v373_v12 }
  0xf6   :  { %492 = shalt.err (!%p489_p4)
}
  0xf7   :  { %s493_s11 = scalar_lea.hbm %s605_s3, 2048 }
  0xf8   :  { %p494_p5 = scmp.ne.s32.totalorder %s605_s3, %s493_s11  ;;  %p497_p6 = scmp.lt.u32.totalorder %s493_s11, %s605_s3 }
  0xfa   :  { %p499_p7 = pnand %p497_p6, %p494_p5 }
  0xfc   :  { %502 = shalt.err (!%p499_p7)
}
  0xfd   :  { %s506_s16 = smov 128   ;;  %s507_s17 = smov 8  }
  0xfe   :  { %403 = dma.vmem_to_hbm [thread:$0]  %s398_s2, 2048, %s605_s3, [#allocation4], %s506_s16, %s506_s16, %s507_s17  }
  0xff   :  { %503 = dma.done.wait [#allocation4], 2048  }
 0x100   :  { %504 = vsyncadd [#allocation4], 4294965248 }
 0x101   :  { %407 = vsyncpa [#allocation4], 1 }

</bundles_post_ra>
